<compile_context>
chip_gen: v6e
topology: v6e:2x2x1
jax: 0.10.0
libtpu: 0.0.40
codegen_flags: <defaults>
</compile_context>

<pallas_src>
import math
import functools

import jax
import jax.numpy as jnp
from jax.experimental import pallas as pl
from jax.experimental.pallas import tpu as pltpu

STATE_DIM = 8     # LunarLander-v2 observation dim
ACTION_DIM = 4    # LunarLander-v2 action dim
H1, H2, H3 = 128, 128, 64
HPAD = 128        # padded lane width for weights / hidden activations
N_LAYERS = 4      # 3 hidden layers + fused (advantage|value) head


def _round_up(n, m):
    return (n + m - 1) // m * m


def _cdiv(a, b):
    return -(-a // b)


def dueling_kernel(x_ref, w_ref, b_ref, out_ref):
    """One batch tile: K=8 first matmul, two 128x128 matmuls, fused head.

    x_ref:   (TB, STATE_DIM)        input observations (any float dtype)
    w_ref:   (4, 128, 128) mm_dtype zero-padded weights (from pack_params)
    b_ref:   (4, 128)      f32      zero-padded biases  (from pack_params)
    out_ref: (TB, ACTION_DIM) f32   Q values
    """
    mm_dtype = w_ref.dtype
    b = b_ref[...]                                       # (4, 128) f32

    # Layer 1: (TB, 8) @ (8, 128) in f32.  Only the top STATE_DIM rows of the
    # padded weight are loaded; no HBM-side lane padding of x is needed.
    x = x_ref[...].astype(jnp.float32)                   # (TB, 8)
    w1 = w_ref[0, :STATE_DIM, :].astype(jnp.float32)     # (8, 128)
    h = jnp.dot(x, w1, preferred_element_type=jnp.float32)
    h = jnp.maximum(h + b[0:1, :], 0.0)                  # bias/ReLU in f32

    # Layers 2-3: lane-dense 128x128 MXU passes, f32 accumulation.
    for j in (1, 2):
        h = jnp.dot(h.astype(mm_dtype), w_ref[j],
                    preferred_element_type=jnp.float32)
        h = jnp.maximum(h + b[j:j + 1, :], 0.0)

    # Fused head: cols 0..ACTION_DIM-1 = advantages A, col ACTION_DIM = V,
    # remaining cols are exactly zero (zero-padded weights and bias).
    hq = jnp.dot(h.astype(mm_dtype), w_ref[3],
                 preferred_element_type=jnp.float32)
    hq = hq + b[3:4, :]                                  # (TB, 128) f32

    a = hq[:, :ACTION_DIM]                               # (TB, 4)
    v = hq[:, ACTION_DIM:ACTION_DIM + 1]                 # (TB, 1)
    # Padded columns are exactly zero, so sum(hq) = sum(A) + V.
    adv_mean = (jnp.sum(hq, axis=-1, keepdims=True) - v) * (1.0 / ACTION_DIM)
    out_ref[...] = (a + (v - adv_mean)).astype(out_ref.dtype)


def pack_params(params, mm_dtype=jnp.bfloat16):
    """Pack the 10 per-layer tensors into (w_blob, b_blob).

    Weights stored (in, out) (transposed vs. PyTorch), biases (1, out).
    The head is packed as [advantages | value] -> columns 0..ACTION_DIM-1 are
    A, column ACTION_DIM is V.  Everything is zero-padded to 128x128 / 128 so
    every layer is one lane-dense MXU pass and the dueling sum-trick is exact.
    Biases stay f32.
    """
    (w1, b1, w2, b2, w3, b3, wv, bv, wa, ba) = params

    w_head = jnp.concatenate([wa, wv], axis=1)           # (H3, ACTION_DIM + 1)
    b_head = jnp.concatenate([ba, bv], axis=1)           # (1,  ACTION_DIM + 1)

    def pad_w(w):
        buf = jnp.zeros((HPAD, HPAD), jnp.float32)
        return buf.at[:w.shape[0], :w.shape[1]].set(w)

    def pad_b(bias):
        buf = jnp.zeros((HPAD,), jnp.float32)
        return buf.at[:bias.shape[1]].set(bias[0])

    w_blob = jnp.stack([pad_w(w1), pad_w(w2), pad_w(w3), pad_w(w_head)])
    b_blob = jnp.stack([pad_b(b1), pad_b(b2), pad_b(b3), pad_b(b_head)])
    return w_blob.astype(mm_dtype), b_blob


@functools.partial(jax.jit, static_argnames=("block_b",))
def dueling_forward(x, w_blob, b_blob, *, block_b=4096):
    """Q(s, a) for a batch of states.  x: (B, STATE_DIM) -> (B, ACTION_DIM).

    w_blob/b_blob must come from pack_params (zero padding is load-bearing).
    """
    assert x.shape[1] == STATE_DIM
    B = x.shape[0]

    b8 = _round_up(B, 8)
    # For large batches cap the tile so the grid has >= 2 steps: the
    # "parallel" batch axis then actually splits across both v7x TensorCores.
    min_steps = 2 if b8 >= 2048 else 1
    tb = min(_round_up(block_b, 8), _round_up(_cdiv(b8, min_steps), 8))
    b_pad = _round_up(B, tb)

    # Only pad the batch (row) dim when needed; no lane padding in HBM.
    if b_pad == B:
        x_in = x
    else:
        x_in = jnp.zeros((b_pad, STATE_DIM), x.dtype).at[:B].set(x)

    out = pl.pallas_call(
        dueling_kernel,
        out_shape=jax.ShapeDtypeStruct((b_pad, ACTION_DIM), jnp.float32),
        grid_spec=pltpu.PrefetchScalarGridSpec(
            num_scalar_prefetch=0,
            grid=(b_pad // tb,),
            in_specs=[
                # x tile: last dim == full array dim (8), so no 128 padding.
                pl.BlockSpec((tb, STATE_DIM), lambda i: (i, 0)),
                # weights / biases: constant index_map -> VMEM resident.
                pl.BlockSpec((N_LAYERS, HPAD, HPAD), lambda i: (0, 0, 0)),
                pl.BlockSpec((N_LAYERS, HPAD), lambda i: (0, 0)),
            ],
            out_specs=pl.BlockSpec((tb, ACTION_DIM), lambda i: (i, 0)),
        ),
        compiler_params=pltpu.CompilerParams(
            dimension_semantics=("parallel",)),
    )(x_in, w_blob, b_blob)

    return out[:B]


def init_params(key):
    """PyTorch nn.Linear-style init U[-1/sqrt(in), 1/sqrt(in)].

    Weights stored as (in, out); biases as (1, out).
    """
    dims = [
        (STATE_DIM, H1),
        (H1, H2),
        (H2, H3),
        (H3, 1),
        (H3, ACTION_DIM),
    ]
    params = []
    for (fan_in, fan_out) in dims:
        key, kw, kb = jax.random.split(key, 3)
        bound = 1.0 / math.sqrt(fan_in)
        w = jax.random.uniform(kw, (fan_in, fan_out), jnp.float32, -bound, bound)
        b = jax.random.uniform(kb, (1, fan_out), jnp.float32, -bound, bound)
        params += [w, b]
    return tuple(params)


def reference_forward(x, params):
    (w1, b1, w2, b2, w3, b3, wv, bv, wa, ba) = params
    h = jax.nn.relu(x @ w1 + b1)
    h = jax.nn.relu(h @ w2 + b2)
    h = jax.nn.relu(h @ w3 + b3)
    v = h @ wv + bv
    a = h @ wa + ba
    return v + (a - a.mean(axis=-1, keepdims=True))


if __name__ == "__main__":
    key = jax.random.PRNGKey(0)
    key, kx = jax.random.split(key)

    B = 2
    x = jax.random.normal(kx, (B, STATE_DIM), jnp.float32)
    params = init_params(key)
    ref = reference_forward(x, params)

    # f32 matmul operands: tight check against the pure-JAX reference.
    w32, b32 = pack_params(params, mm_dtype=jnp.float32)
    out32 = jax.block_until_ready(dueling_forward(x, w32, b32))
    assert out32.shape == (B, ACTION_DIM)
    assert jnp.allclose(out32, ref, atol=1e-4, rtol=1e-4)

    # bf16 matmul operands (recommended perf path on v6e/v7x), f32 accumulate.
    wbf, bbf = pack_params(params, mm_dtype=jnp.bfloat16)
    outbf = jax.block_until_ready(dueling_forward(x, wbf, bbf))
    assert outbf.shape == (B, ACTION_DIM)
    assert jnp.allclose(outbf, ref, atol=5e-2, rtol=5e-2)

    # Exercise the multi-step grid / ragged-batch path (still tiny).
    B2 = 27
    key, kx2 = jax.random.split(key)
    x2 = jax.random.normal(kx2, (B2, STATE_DIM), jnp.float32)
    ref2 = reference_forward(x2, params)
    out2 = jax.block_until_ready(dueling_forward(x2, w32, b32, block_b=8))
    assert out2.shape == (B2, ACTION_DIM)
    assert jnp.allclose(out2, ref2, atol=1e-4, rtol=1e-4)

    print("KERNEL_OK")
</pallas_src>

<mosaic_0001>
module attributes {stable_mosaic.version = 11 : i64} {
  func.func @dueling_kernel(%arg0: i32, %arg1: memref<8x8xf32, #tpu.memory_space<vmem>>, %arg2: memref<4x128x128xf32, #tpu.memory_space<vmem>>, %arg3: memref<4x128xf32, #tpu.memory_space<vmem>>, %arg4: memref<8x4xf32, #tpu.memory_space<vmem>>) attributes {dimension_semantics = [#tpu.dimension_semantics<parallel>], iteration_bounds = array<i64: 1>, scalar_prefetch = 0 : i64, scratch_operands = 0 : i64, tpu.core_type = #tpu.core_type<tc>, window_params = [{transform_indices = @transform_0, window_bounds = array<i64: 8, 8>}, {pipeline_mode = #tpu.pipeline_mode<synchronous>, transform_indices = @transform_1, window_bounds = array<i64: 4, 128, 128>}, {pipeline_mode = #tpu.pipeline_mode<synchronous>, transform_indices = @transform_2, window_bounds = array<i64: 4, 128>}, {transform_indices = @transform_3, window_bounds = array<i64: 8, 4>}]} {
    %c0 = arith.constant 0 : index
    %c0_0 = arith.constant 0 : index
    %0 = vector.load %arg3[%c0, %c0_0] : memref<4x128xf32, #tpu.memory_space<vmem>>, vector<4x128xf32>
    %c0_1 = arith.constant 0 : index
    %c0_2 = arith.constant 0 : index
    %1 = vector.load %arg1[%c0_1, %c0_2] : memref<8x8xf32, #tpu.memory_space<vmem>>, vector<8x8xf32>
    %c0_3 = arith.constant 0 : index
    %c0_4 = arith.constant 0 : index
    %c0_5 = arith.constant 0 : index
    %2 = vector.load %arg2[%c0_3, %c0_4, %c0_5] : memref<4x128x128xf32, #tpu.memory_space<vmem>>, vector<1x8x128xf32>
    %3 = vector.shape_cast %2 : vector<1x8x128xf32> to vector<8x128xf32>
    %cst = arith.constant dense<0.000000e+00> : vector<8x128xf32>
    %4 = tpu.matmul %1, %3, %cst {dimension_numbers = #tpu.dot_dimension_numbers<[1], [0], [0], [1], [0, 0, 1, 1], [], []>} : vector<8x8xf32>, vector<8x128xf32>, vector<8x128xf32> -> vector<8x128xf32>
    %5 = vector.extract_strided_slice %0 {offsets = [0, 0], sizes = [1, 128], strides = [1, 1]} : vector<4x128xf32> to vector<1x128xf32>
    %6 = vector.broadcast %5 : vector<1x128xf32> to vector<8x128xf32>
    %7 = arith.addf %4, %6 : vector<8x128xf32>
    %cst_6 = arith.constant 0.000000e+00 : f32
    %8 = vector.broadcast %cst_6 : f32 to vector<8x128xf32>
    %9 = arith.maximumf %7, %8 : vector<8x128xf32>
    %c1 = arith.constant 1 : index
    %c0_7 = arith.constant 0 : index
    %c0_8 = arith.constant 0 : index
    %10 = vector.load %arg2[%c1, %c0_7, %c0_8] : memref<4x128x128xf32, #tpu.memory_space<vmem>>, vector<1x128x128xf32>
    %11 = vector.shape_cast %10 : vector<1x128x128xf32> to vector<128x128xf32>
    %cst_9 = arith.constant dense<0.000000e+00> : vector<8x128xf32>
    %12 = tpu.matmul %9, %11, %cst_9 {dimension_numbers = #tpu.dot_dimension_numbers<[1], [0], [0], [1], [0, 0, 1, 1], [], []>} : vector<8x128xf32>, vector<128x128xf32>, vector<8x128xf32> -> vector<8x128xf32>
    %13 = vector.extract_strided_slice %0 {offsets = [1, 0], sizes = [1, 128], strides = [1, 1]} : vector<4x128xf32> to vector<1x128xf32>
    %14 = vector.broadcast %13 : vector<1x128xf32> to vector<8x128xf32>
    %15 = arith.addf %12, %14 : vector<8x128xf32>
    %cst_10 = arith.constant 0.000000e+00 : f32
    %16 = vector.broadcast %cst_10 : f32 to vector<8x128xf32>
    %17 = arith.maximumf %15, %16 : vector<8x128xf32>
    %c2 = arith.constant 2 : index
    %c0_11 = arith.constant 0 : index
    %c0_12 = arith.constant 0 : index
    %18 = vector.load %arg2[%c2, %c0_11, %c0_12] : memref<4x128x128xf32, #tpu.memory_space<vmem>>, vector<1x128x128xf32>
    %19 = vector.shape_cast %18 : vector<1x128x128xf32> to vector<128x128xf32>
    %cst_13 = arith.constant dense<0.000000e+00> : vector<8x128xf32>
    %20 = tpu.matmul %17, %19, %cst_13 {dimension_numbers = #tpu.dot_dimension_numbers<[1], [0], [0], [1], [0, 0, 1, 1], [], []>} : vector<8x128xf32>, vector<128x128xf32>, vector<8x128xf32> -> vector<8x128xf32>
    %21 = vector.extract_strided_slice %0 {offsets = [2, 0], sizes = [1, 128], strides = [1, 1]} : vector<4x128xf32> to vector<1x128xf32>
    %22 = vector.broadcast %21 : vector<1x128xf32> to vector<8x128xf32>
    %23 = arith.addf %20, %22 : vector<8x128xf32>
    %cst_14 = arith.constant 0.000000e+00 : f32
    %24 = vector.broadcast %cst_14 : f32 to vector<8x128xf32>
    %25 = arith.maximumf %23, %24 : vector<8x128xf32>
    %c3 = arith.constant 3 : index
    %c0_15 = arith.constant 0 : index
    %c0_16 = arith.constant 0 : index
    %26 = vector.load %arg2[%c3, %c0_15, %c0_16] : memref<4x128x128xf32, #tpu.memory_space<vmem>>, vector<1x128x128xf32>
    %27 = vector.shape_cast %26 : vector<1x128x128xf32> to vector<128x128xf32>
    %cst_17 = arith.constant dense<0.000000e+00> : vector<8x128xf32>
    %28 = tpu.matmul %25, %27, %cst_17 {dimension_numbers = #tpu.dot_dimension_numbers<[1], [0], [0], [1], [0, 0, 1, 1], [], []>} : vector<8x128xf32>, vector<128x128xf32>, vector<8x128xf32> -> vector<8x128xf32>
    %29 = vector.extract_strided_slice %0 {offsets = [3, 0], sizes = [1, 128], strides = [1, 1]} : vector<4x128xf32> to vector<1x128xf32>
    %30 = vector.broadcast %29 : vector<1x128xf32> to vector<8x128xf32>
    %31 = arith.addf %28, %30 : vector<8x128xf32>
    %32 = vector.extract_strided_slice %31 {offsets = [0, 0], sizes = [8, 4], strides = [1, 1]} : vector<8x128xf32> to vector<8x4xf32>
    %33 = vector.extract_strided_slice %31 {offsets = [0, 4], sizes = [8, 1], strides = [1, 1]} : vector<8x128xf32> to vector<8x1xf32>
    %cst_18 = arith.constant dense<0.000000e+00> : vector<8xf32>
    %34 = vector.multi_reduction <add>, %31, %cst_18 [1] : vector<8x128xf32> to vector<8xf32>
    %35 = vector.shape_cast %34 : vector<8xf32> to vector<8x1xf32>
    %36 = arith.subf %35, %33 : vector<8x1xf32>
    %cst_19 = arith.constant 2.500000e-01 : f32
    %37 = vector.broadcast %cst_19 : f32 to vector<8x1xf32>
    %38 = arith.mulf %36, %37 : vector<8x1xf32>
    %39 = arith.subf %33, %38 : vector<8x1xf32>
    %40 = vector.broadcast %39 : vector<8x1xf32> to vector<8x4xf32>
    %41 = arith.addf %32, %40 : vector<8x4xf32>
    %c0_20 = arith.constant 0 : index
    %c0_21 = arith.constant 0 : index
    %42 = vector.load %arg4[%c0_20, %c0_21] : memref<8x4xf32, #tpu.memory_space<vmem>>, vector<8x4xf32>
    tpu.vector_store %arg4[%c0_20, %c0_21], %41 {strides = array<i32>} : memref<8x4xf32, #tpu.memory_space<vmem>>, vector<8x4xf32>,
    return
  }
  func.func @transform_0(%arg0: i32) -> (i32, i32) {
    %c0_i32 = arith.constant 0 : i32
    %c0_i32_0 = arith.constant 0 : i32
    return %arg0, %c0_i32 : i32, i32
  }
  func.func @transform_1(%arg0: i32) -> (i32, i32, i32) {
    %c0_i32 = arith.constant 0 : i32
    %c0_i32_0 = arith.constant 0 : i32
    %c0_i32_1 = arith.constant 0 : i32
    %c0_i32_2 = arith.constant 0 : i32
    return %c0_i32, %c0_i32_0, %c0_i32_1 : i32, i32, i32
  }
  func.func @transform_2(%arg0: i32) -> (i32, i32) {
    %c0_i32 = arith.constant 0 : i32
    %c0_i32_0 = arith.constant 0 : i32
    %c0_i32_1 = arith.constant 0 : i32
    return %c0_i32, %c0_i32_0 : i32, i32
  }
  func.func @transform_3(%arg0: i32) -> (i32, i32) {
    %c0_i32 = arith.constant 0 : i32
    %c0_i32_0 = arith.constant 0 : i32
    return %arg0, %c0_i32 : i32, i32
  }
}

</mosaic_0001>

<bundles_post_ra>
// kernel: dueling_forward.1
= control target key start
LH: loop header
LB: loop body
LE: loop exit
PB: predicated region body
PF: predicated region fallthrough
CT: control target
= control target key end

     0   :  { %8 = vsyncpa [#allocation3], 0  ;;  %s596_s12 = smov [#allocation2]   ;;  %s703_s0 = inlined_call_operand.vmem [shape: f32[8,8], index: 0, kind: input, shape index: {}]   ;;  %s704_s1 = inlined_call_operand.hbm [shape: f32[4,128,128], index: 1, kind: input, shape index: {}]   ;;  %s705_s2 = inlined_call_operand.vmem [shape: f32[4,128], index: 2, kind: input, shape index: {}]   ;;  %s706_s3 = inlined_call_operand.vmem [shape: f32[8,4], index: 3, kind: output, shape index: {}]  }
   0x1   :  { %s16_s13 = sshll.u32 %s596_s12, 4  ;;  %s17_s13 = int_to_ptr.vmem [resolvable:$true] %s16_s13 }
   0x2   :  { %s582_s14 = scalar_lea.vmem %s17_s13, 8192  ;;  %p587_p1 = scmp.lt.s32.totalorder %s17_s13, %s17_s13 }
   0x3   :  { %p583_p0 = scmp.ne.s32.totalorder %s17_s13, %s582_s14  ;;  %p588_p2 = scmp.lt.s32.totalorder %s582_s14, %s582_s14 }
   0x5   :  { %p589_p3 = por %p588_p2, %p587_p1 }
   0x7   :  { %p590_p4 = pnand %p589_p3, %p583_p0 }
   0x9   :  { %593 = shalt.err (!%p590_p4)
}
   0xa   :  { %s597_s15 = smov 128   ;;  %s598_s16 = smov 8  }
   0xb   :  { %22 = dma.hbm_to_vmem [thread:$0]  %s704_s1, 8192, %s17_s13, [#allocation3], %s597_s15, %s597_s15, %s598_s16  }
   0xc   :  { %594 = dma.done.wait [#allocation3], 8192  }
   0xd   :  { %595 = vsyncadd [#allocation3], 4294959104  ;;  %v599_v0 = vmov 0.0   ;;  %vm600_vm0 = vmmov 0   ;;  %vm35_vm1 = vcmask 64512   ;;  %v30_v1 = vld [vmem:[#allocation2] sm:$0xff]  ;;  %v31_v32 = vlaneseq }
   0xe   :  { %457 = vmatprep.subr.mxu0 %v599_v0  ;;  %459 = vmatprep.mubr.msk.f32.mxu0 %vm600_vm0, %v599_v0  ;;  %v29_v2 = vld [vmem:[%s703_s0] sm:$0xff]  ;;  %v126_v3 = vld [vmem:[#allocation2 + $0xf8] sm:$0xff]  ;;  %v125_v4 = vld [vmem:[#allocation2 + $0xf0] sm:$0xff]  ;;  %vm396_vm2 = vcmask 31744  }
   0xf   :  { %462 = vmatprep.subr.mxu1 %v599_v0  ;;  %494 = vmatprep.mubr.msk.f32.mxu1 %vm600_vm0, %v599_v0  ;;  %v124_v5 = vld [vmem:[#allocation2 + $0xe8] sm:$0xff]  ;;  %v123_v6 = vld [vmem:[#allocation2 + $0xe0] sm:$0xff]  ;;  %v122_v7 = vld [vmem:[#allocation2 + $0xd8] sm:$0xff]  ;;  %v666_v33 = vshrl.u32 %v31_v32, 7 }
  0x10   :  { %458 = vmatpush3.msra.mxu0 %v30_v1  ;;  %463 = vmatpush3.msra.mxu1 %v126_v3  ;;  %v121_v8 = vld [vmem:[#allocation2 + $0xd0] sm:$0xff]  ;;  %v120_v9 = vld [vmem:[#allocation2 + $0xc8] sm:$0xff]  ;;  %v119_v10 = vld [vmem:[#allocation2 + $0xc0] sm:$0xff] }
  0x11   :  { %460 = vmatmul.mubr.msk.f32.vlgmr.msra.gmra.mxu0 %vm35_vm1, %v29_v2  ;;  %464 = vmatprep.subr.mxu1 %v599_v0  ;;  %v118_v11 = vld [vmem:[#allocation2 + $0xb8] sm:$0xff]  ;;  %v117_v12 = vld [vmem:[#allocation2 + $0xb0] sm:$0xff]  ;;  %v116_v13 = vld [vmem:[#allocation2 + $0xa8] sm:$0xff]  ;;  %v33_v34 = vsub.s32 0, %v666_v33  ;;  %v129_v57 = vsub.s32 1, %v666_v33  ;;  %v221_v3 = vsub.s32 2, %v666_v33 }
  0x12   :  { %465 = vmatpush3.msra.mxu1 %v125_v4  ;;  %497 = vmatprep.subr.mxu0 %v599_v0  ;;  %v115_v14 = vld [vmem:[#allocation2 + $0xa0] sm:$0xff]  ;;  %v114_v15 = vld [vmem:[#allocation2 + $0x98] sm:$0xff]  ;;  %v113_v16 = vld [vmem:[#allocation2 + $0x90] sm:$0xff] }
  0x13   :  { %466 = vmatprep.subr.mxu1 %v599_v0  ;;  %529 = vmatprep.mubr.msk.f32.mxu0 %vm600_vm0, %v599_v0  ;;  %v112_v17 = vld [vmem:[#allocation2 + $0x88] sm:$0xff]  ;;  %v111_v18 = vld [vmem:[#allocation2 + $0x80] sm:$0xff]  ;;  %v218_v19 = vld [vmem:[#allocation2 + $0x178] sm:$0xff] }
  0x14   :  { %467 = vmatpush3.msra.mxu1 %v124_v5  ;;  %v217_v20 = vld [vmem:[#allocation2 + $0x170] sm:$0xff]  ;;  %498 = vmatpush3.msra.mxu0 %v218_v19  ;;  %v216_v21 = vld [vmem:[#allocation2 + $0x168] sm:$0xff]  ;;  %v215_v22 = vld [vmem:[#allocation2 + $0x160] sm:$0xff] }
  0x15   :  { %468 = vmatprep.subr.mxu1 %v599_v0  ;;  %499 = vmatprep.subr.mxu0 %v599_v0  ;;  %v214_v23 = vld [vmem:[#allocation2 + $0x158] sm:$0xff]  ;;  %v213_v24 = vld [vmem:[#allocation2 + $0x150] sm:$0xff]  ;;  %v212_v25 = vld [vmem:[#allocation2 + $0x148] sm:$0xff] }
  0x16   :  { %469 = vmatpush3.msra.mxu1 %v123_v6  ;;  %500 = vmatpush3.msra.mxu0 %v217_v20  ;;  %v211_v26 = vld [vmem:[#allocation2 + $0x140] sm:$0xff]  ;;  %v210_v27 = vld [vmem:[#allocation2 + $0x138] sm:$0xff]  ;;  %v209_v28 = vld [vmem:[#allocation2 + $0x130] sm:$0xff] }
  0x17   :  { %470 = vmatprep.subr.mxu1 %v599_v0  ;;  %501 = vmatprep.subr.mxu0 %v599_v0  ;;  %v208_v29 = vld [vmem:[#allocation2 + $0x128] sm:$0xff]  ;;  %v207_v30 = vld [vmem:[#allocation2 + $0x120] sm:$0xff]  ;;  %v206_v31 = vld [vmem:[#allocation2 + $0x118] sm:$0xff] }
  0x18   :  { %471 = vmatpush3.msra.mxu1 %v122_v7  ;;  %502 = vmatpush3.msra.mxu0 %v216_v21  ;;  %v672_v35 = vld [vmem:[%s705_s2] sm:$0xf]  ;;  %v205_v41 = vld [vmem:[#allocation2 + $0x110] sm:$0xff]  ;;  %v204_v42 = vld [vmem:[#allocation2 + $0x108] sm:$0xff] }
  0x19   :  { %472 = vmatprep.subr.mxu1 %v599_v0  ;;  %503 = vmatprep.subr.mxu0 %v599_v0  ;;  %v34_v36 = vrot.slane %v672_v35, %v33_v34  ;;  %v203_v43 = vld [vmem:[#allocation2 + $0x100] sm:$0xff]  ;;  %v310_v44 = vld [vmem:[#allocation2 + $0x1f8] sm:$0xff]  ;;  %v309_v45 = vld [vmem:[#allocation2 + $0x1f0] sm:$0xff]  ;;  %v130_v58 = vrot.slane %v672_v35, %v129_v57  ;;  %v222_v4 = vrot.slane %v672_v35, %v221_v3 }
  0x1a   :  { %473 = vmatpush3.msra.mxu1 %v121_v8  ;;  %504 = vmatpush3.msra.mxu0 %v215_v22  ;;  %v308_v46 = vld [vmem:[#allocation2 + $0x1e8] sm:$0xff]  ;;  %v307_v47 = vld [vmem:[#allocation2 + $0x1e0] sm:$0xff]  ;;  %v306_v48 = vld [vmem:[#allocation2 + $0x1d8] sm:$0xff] }
  0x1b   :  { %474 = vmatprep.subr.mxu1 %v599_v0  ;;  %505 = vmatprep.subr.mxu0 %v599_v0  ;;  %v305_v49 = vld [vmem:[#allocation2 + $0x1d0] sm:$0xff]  ;;  %v304_v50 = vld [vmem:[#allocation2 + $0x1c8] sm:$0xff]  ;;  %v303_v51 = vld [vmem:[#allocation2 + $0x1c0] sm:$0xff] }
  0x1c   :  { %475 = vmatpush3.msra.mxu1 %v120_v9  ;;  %506 = vmatpush3.msra.mxu0 %v214_v23  ;;  %v302_v52 = vld [vmem:[#allocation2 + $0x1b8] sm:$0xff]  ;;  %v301_v53 = vld [vmem:[#allocation2 + $0x1b0] sm:$0xff]  ;;  %v300_v54 = vld [vmem:[#allocation2 + $0x1a8] sm:$0xff]  ;;  %v313_v9 = vsub.s32 3, %v666_v33 }
  0x1d   :  { %476 = vmatprep.subr.mxu1 %v599_v0  ;;  %507 = vmatprep.subr.mxu0 %v599_v0  ;;  %v299_v55 = vld [vmem:[#allocation2 + $0x1a0] sm:$0xff]  ;;  %v298_v56 = vld [vmem:[#allocation2 + $0x198] sm:$0xff]  ;;  %v297_v63 = vld [vmem:[#allocation2 + $0x190] sm:$0xff] }
  0x1e   :  { %477 = vmatpush3.msra.mxu1 %v119_v10  ;;  %508 = vmatpush3.msra.mxu0 %v213_v24  ;;  %v296_v1 = vld [vmem:[#allocation2 + $0x188] sm:$0xff]  ;;  %v295_v2 = vld [vmem:[#allocation2 + $0x180] sm:$0xff]  ;;  %v314_v10 = vrot.slane %v672_v35, %v313_v9 }
  0x1f   :  { %478 = vmatprep.subr.mxu1 %v599_v0  ;;  %509 = vmatprep.subr.mxu0 %v599_v0 }
  0x20   :  { %479 = vmatpush3.msra.mxu1 %v118_v11  ;;  %510 = vmatpush3.msra.mxu0 %v212_v25 }
  0x21   :  { %480 = vmatprep.subr.mxu1 %v599_v0  ;;  %511 = vmatprep.subr.mxu0 %v599_v0 }
  0x22   :  { %481 = vmatpush3.msra.mxu1 %v117_v12  ;;  %512 = vmatpush3.msra.mxu0 %v211_v26 }
  0x23   :  { %482 = vmatprep.subr.mxu1 %v599_v0  ;;  %513 = vmatprep.subr.mxu0 %v599_v0 }
  0x24   :  { %483 = vmatpush3.msra.mxu1 %v116_v13  ;;  %514 = vmatpush3.msra.mxu0 %v210_v27 }
  0x25   :  { %484 = vmatprep.subr.mxu1 %v599_v0  ;;  %515 = vmatprep.subr.mxu0 %v599_v0 }
  0x26   :  { %485 = vmatpush3.msra.mxu1 %v115_v14  ;;  %516 = vmatpush3.msra.mxu0 %v209_v28 }
  0x27   :  { %486 = vmatprep.subr.mxu1 %v599_v0  ;;  %517 = vmatprep.subr.mxu0 %v599_v0 }
  0x28   :  { %487 = vmatpush3.msra.mxu1 %v114_v15  ;;  %518 = vmatpush3.msra.mxu0 %v208_v29 }
  0x29   :  { %488 = vmatprep.subr.mxu1 %v599_v0  ;;  %519 = vmatprep.subr.mxu0 %v599_v0 }
  0x2a   :  { %489 = vmatpush3.msra.mxu1 %v113_v16  ;;  %520 = vmatpush3.msra.mxu0 %v207_v30 }
  0x2b   :  { %490 = vmatprep.subr.mxu1 %v599_v0  ;;  %521 = vmatprep.subr.mxu0 %v599_v0 }
  0x2c   :  { %491 = vmatpush3.msra.mxu1 %v112_v17  ;;  %522 = vmatpush3.msra.mxu0 %v206_v31 }
  0x2d   :  { %492 = vmatprep.subr.mxu1 %v599_v0  ;;  %523 = vmatprep.subr.mxu0 %v599_v0 }
  0x2e   :  { %493 = vmatpush3.msra.mxu1 %v111_v18  ;;  %524 = vmatpush3.msra.mxu0 %v205_v41 }
  0x2f   :  { %532 = vmatprep.subr.mxu1 %v599_v0  ;;  %525 = vmatprep.subr.mxu0 %v599_v0 }
  0x30   :  { %526 = vmatpush3.msra.mxu0 %v204_v42 }
  0x31   :  { %527 = vmatprep.subr.mxu0 %v599_v0 }
  0x32   :  { %528 = vmatpush3.msra.mxu0 %v203_v43 }
  0xd1   :  { %v105_v37 = vpop.f32.mrf.mxu0 }
  0xd2   :  { %v106_v38 = vadd.f32 %v105_v37, %v34_v36 }
  0xd3   :  { %v461_v39 = vpop.f32.mrf.mxu0 }
  0xd4   :  { %v109_v40 = vmax.f32 %v106_v38, 0.0 }
  0xd6   :  { %495 = vmatmul.mubr.f32.vlgmr.msra.gmra.mxu1 %v109_v40 }
  0xd7   :  { %564 = vmatprep.mubr.msk.f32.mxu1 %vm600_vm0, %v599_v0  ;;  %533 = vmatpush3.msra.mxu1 %v310_v44 }
  0xd8   :  { %534 = vmatprep.subr.mxu1 %v599_v0 }
  0xd9   :  { %535 = vmatpush3.msra.mxu1 %v309_v45 }
  0xda   :  { %536 = vmatprep.subr.mxu1 %v599_v0 }
  0xdb   :  { %537 = vmatpush3.msra.mxu1 %v308_v46 }
  0xdc   :  { %538 = vmatprep.subr.mxu1 %v599_v0 }
  0xdd   :  { %539 = vmatpush3.msra.mxu1 %v307_v47 }
  0xde   :  { %540 = vmatprep.subr.mxu1 %v599_v0 }
  0xdf   :  { %541 = vmatpush3.msra.mxu1 %v306_v48 }
  0xe0   :  { %542 = vmatprep.subr.mxu1 %v599_v0 }
  0xe1   :  { %543 = vmatpush3.msra.mxu1 %v305_v49 }
  0xe2   :  { %544 = vmatprep.subr.mxu1 %v599_v0 }
  0xe3   :  { %545 = vmatpush3.msra.mxu1 %v304_v50 }
  0xe4   :  { %546 = vmatprep.subr.mxu1 %v599_v0 }
  0xe5   :  { %547 = vmatpush3.msra.mxu1 %v303_v51 }
  0xe6   :  { %548 = vmatprep.subr.mxu1 %v599_v0 }
  0xe7   :  { %549 = vmatpush3.msra.mxu1 %v302_v52 }
  0xe8   :  { %550 = vmatprep.subr.mxu1 %v599_v0 }
  0xe9   :  { %551 = vmatpush3.msra.mxu1 %v301_v53 }
  0xea   :  { %552 = vmatprep.subr.mxu1 %v599_v0 }
  0xeb   :  { %553 = vmatpush3.msra.mxu1 %v300_v54 }
  0xec   :  { %554 = vmatprep.subr.mxu1 %v599_v0 }
  0xed   :  { %555 = vmatpush3.msra.mxu1 %v299_v55 }
  0xee   :  { %556 = vmatprep.subr.mxu1 %v599_v0 }
  0xef   :  { %557 = vmatpush3.msra.mxu1 %v298_v56 }
  0xf0   :  { %558 = vmatprep.subr.mxu1 %v599_v0 }
  0xf1   :  { %559 = vmatpush3.msra.mxu1 %v297_v63 }
  0xf2   :  { %560 = vmatprep.subr.mxu1 %v599_v0 }
  0xf3   :  { %561 = vmatpush3.msra.mxu1 %v296_v1 }
  0xf4   :  { %562 = vmatprep.subr.mxu1 %v599_v0  ;;  %v601_v0 = vmov 4  }
  0xf5   :  { %563 = vmatpush3.msra.mxu1 %v295_v2  ;;  %573 = vset.pattern.permute.xlu0 %v601_v0 }
 0x196   :  { %v197_v59 = vpop.f32.mrf.mxu1 }
 0x197   :  { %v198_v60 = vadd.f32 %v197_v59, %v130_v58 }
 0x198   :  { %v496_v61 = vpop.f32.mrf.mxu1 }
 0x199   :  { %v201_v62 = vmax.f32 %v198_v60, 0.0 }
 0x19b   :  { %530 = vmatmul.mubr.f32.vlgmr.msra.gmra.mxu0 %v201_v62 }
 0x25b   :  { %v289_v5 = vpop.f32.mrf.mxu0 }
 0x25c   :  { %v290_v6 = vadd.f32 %v289_v5, %v222_v4 }
 0x25d   :  { %v531_v7 = vpop.f32.mrf.mxu0 }
 0x25e   :  { %v293_v8 = vmax.f32 %v290_v6, 0.0 }
 0x260   :  { %565 = vmatmul.mubr.f32.vlgmr.msra.gmra.mxu1 %v293_v8 }
 0x320   :  { %v381_v11 = vpop.f32.mrf.mxu1 }
 0x321   :  { %v382_v12 = vadd.f32 %v381_v11, %v314_v10 }
 0x322   :  { %v566_v13 = vpop.f32.mrf.mxu1 }
 0x323   :  { %385 = vadd.xlane.f32.xlu0 %v382_v12 }
 0x3ac   :  { %v386_v14 = vpop.xlane.xlu0 %385 }
 0x3ad   :  { %v387_v15 = vsub.f32 %v386_v14, %v382_v12 }
 0x3af   :  { %v388_v16 = vmul.f32 0.25, %v387_v15 }
 0x3b1   :  { %v389_v17 = vsub.f32 %v382_v12, %v388_v16 }
 0x3b3   :  { %392 = vperm.xlu0 %573, %v389_v17  }
 0x42e   :  { %v393_v18 = vpop.permute.xlu0 %392 }
 0x42f   :  { %v395_v19 = vadd.f32 %v393_v18, %v382_v12 }
 0x431   :  { %397 = vst.msk [vmem:[%s706_s3] sm:$0xff] %vm396_vm2, %v395_v19 }
 0x432   :  { %402 = vsyncpa [#allocation3], 1 }

</bundles_post_ra>
